<compile_context>
chip_gen: v7x
topology: tpu7x:2x2x1
jax: 0.10.0
libtpu: 0.0.40
codegen_flags: <defaults>
</compile_context>

<pallas_src>
import functools

import jax
import jax.numpy as jnp
from jax.experimental import pallas as pl
from jax.experimental.pallas import tpu as pltpu

_LANE = 128
_MAX_TILE_B = 2048  # keeps per-step VMEM tiny even under v5e's 16 MiB default


def _round_up(v, m):
    return (v + m - 1) // m * m


def _dueling_kernel(n_states, a_out, activation, x_ref, w_ref, b_ref, out_ref):
    """One batch tile of the dueling head.

    x_ref  : [tile_b, n_states] input rows (no lane padding)
    w_ref  : [4, 128, 128]      packed weights (f32 or bf16)
    b_ref  : [8, 128]           packed biases, f32 (rows 0..3 used)
    out_ref: [tile_b, a_out]    lanes 0..n_actions-1 = advantage, lane n_actions = value
    """
    if activation == "Tanh":
        act = jnp.tanh
    else:  # "ReLU"
        act = lambda t: jnp.maximum(t, 0.0)

    md = w_ref.dtype            # matmul operand dtype (f32 exact / bf16 fast)
    b = b_ref[...]              # biases + activations stay f32 (v5e-safe)

    x = x_ref[...].astype(md)   # [tile_b, n_states]
    w0 = w_ref[0, :n_states, :]  # only the live rows of linear1

    # linear1 -> act
    h = act(jnp.dot(x, w0, preferred_element_type=jnp.float32) + b[0:1])
    # linear2 -> act (lanes 64..127 stay act(0) == 0 for Tanh/ReLU)
    h = act(jnp.dot(h.astype(md), w_ref[1],
                    preferred_element_type=jnp.float32) + b[1:2])
    # fused adv/value hidden: lanes 0..63 = adv hidden, 64..127 = value hidden
    hb = act(jnp.dot(h.astype(md), w_ref[2],
                     preferred_element_type=jnp.float32) + b[2:3])
    # fused branch outputs: lanes 0..n_actions-1 = advantage, lane n_actions = value
    y = jnp.dot(hb.astype(md), w_ref[3],
                preferred_element_type=jnp.float32) + b[3:4]
    out_ref[...] = y[:, :a_out]
    # TODO(synk): if post-DMA profiling shows vst/EUP binding, split the tile
    # with an inner unrolled fori_loop over 128-256 row sub-blocks.


def pack_params(params, n_states, n_actions, matmul_dtype=jnp.float32):
    """Pack 12 weight/bias arrays into one [4,128,128] weight stack and one
    [8,128] f32 bias slab, fusing the advantage/value branches. Zero padding
    keeps the math exact (zeros contribute nothing; act(0) == 0 for Tanh/ReLU).

    Call once per weight update, not per forward call."""
    if n_states > _LANE:
        # TODO(synk): tile linear1 over its input dim to support n_states > 128.
        raise ValueError("pack_params assumes n_states <= 128")
    if n_actions + 1 > _LANE:
        raise ValueError("pack_params assumes n_actions < 128")

    # Explicit shape checks (clear errors instead of broadcast failures).
    assert params["w1"].shape == (n_states, 128), params["w1"].shape
    assert params["w2"].shape == (128, 64), params["w2"].shape
    assert params["wa"].shape == (64, 64), params["wa"].shape
    assert params["wv"].shape == (64, 64), params["wv"].shape
    assert params["wa2"].shape == (64, n_actions), params["wa2"].shape
    assert params["wv2"].shape == (64, 1), params["wv2"].shape

    W = jnp.zeros((4, _LANE, _LANE), jnp.float32)
    B = jnp.zeros((8, _LANE), jnp.float32)

    # layer 0: linear1  [n_states, 128]
    W = W.at[0, :n_states, :].set(params["w1"])
    B = B.at[0, :].set(params["b1"].reshape(-1))

    # layer 1: linear2  [128, 64] (cols 64.. padded)
    W = W.at[1, :, :64].set(params["w2"])
    B = B.at[1, :64].set(params["b2"].reshape(-1))

    # layer 2: fused branch hidden  [wa | wv] in rows 0..63
    W = W.at[2, :64, :64].set(params["wa"])
    W = W.at[2, :64, 64:].set(params["wv"])
    B = B.at[2, :64].set(params["ba"].reshape(-1))
    B = B.at[2, 64:].set(params["bv"].reshape(-1))

    # layer 3: fused branch out: adv (rows 0..63 -> cols 0..n_actions-1),
    #                            value (rows 64..127 -> col n_actions)
    W = W.at[3, :64, :n_actions].set(params["wa2"])
    W = W.at[3, 64:, n_actions:n_actions + 1].set(params["wv2"])
    B = B.at[3, :n_actions].set(params["ba2"].reshape(-1))
    B = B.at[3, n_actions:n_actions + 1].set(params["bv2"].reshape(-1))

    return W.astype(matmul_dtype), B


def dueling_network_forward(x, W, B, n_actions, activation="Tanh", tile_b=None):
    """DuelingNetwork forward as a batch-tiled Pallas TPU kernel.

    x: [batch, n_states] float32
    W, B: packed params from pack_params (W dtype selects f32 / bf16 matmuls)
    returns: [batch, n_actions] float32
    """
    if activation not in ("Tanh", "ReLU"):
        raise ValueError("activation must be 'Tanh' or 'ReLU'")

    batch, n_states = x.shape
    a_out = _round_up(n_actions + 1, 8)

    if tile_b is None:
        if batch <= 256:
            tile_b = _round_up(max(batch, 1), 8)
        else:
            # Even number of grid steps so both v7x TensorCores stay fed,
            # tile capped at _MAX_TILE_B rows for v5e's scoped-VMEM default.
            n_steps = 2 * pl.cdiv(batch, 2 * _MAX_TILE_B)
            tile_b = _round_up(pl.cdiv(batch, n_steps), 8)
    tile_b = _round_up(tile_b, 8)

    grid = (pl.cdiv(batch, tile_b),)

    out = pl.pallas_call(
        functools.partial(_dueling_kernel, n_states, a_out, activation),
        out_shape=jax.ShapeDtypeStruct((batch, a_out), jnp.float32),
        grid=grid,
        in_specs=[
            pl.BlockSpec((tile_b, n_states), lambda i: (i, 0)),
            pl.BlockSpec((4, _LANE, _LANE), lambda i: (0, 0, 0)),
            pl.BlockSpec((8, _LANE), lambda i: (0, 0)),
        ],
        out_specs=pl.BlockSpec((tile_b, a_out), lambda i: (i, 0)),
        compiler_params=pltpu.CompilerParams(
            dimension_semantics=("parallel",)),
    )(x.astype(jnp.float32), W, B)

    adv = out[:, :n_actions]
    val = out[:, n_actions:n_actions + 1]
    # PyTorch: output_value + output_advantage - output_advantage.mean()
    # (GLOBAL mean over batch AND actions — done here so it spans all tiles.)
    return val + adv - jnp.mean(adv)


def init_params(key, n_states, n_actions):
    """Deterministic init mimicking PyTorch nn.Linear defaults
    (uniform(-1/sqrt(fan_in), 1/sqrt(fan_in))). Weights stored as [in, out]."""
    def linear(key, fan_in, fan_out):
        kw, kb = jax.random.split(key)
        bound = 1.0 / jnp.sqrt(fan_in)
        w = jax.random.uniform(kw, (fan_in, fan_out), jnp.float32, -bound, bound)
        b = jax.random.uniform(kb, (1, fan_out), jnp.float32, -bound, bound)
        return w, b

    keys = jax.random.split(key, 6)
    w1, b1 = linear(keys[0], n_states, 128)
    w2, b2 = linear(keys[1], 128, 64)
    wa, ba = linear(keys[2], 64, 64)
    wa2, ba2 = linear(keys[3], 64, n_actions)
    wv, bv = linear(keys[4], 64, 64)
    wv2, bv2 = linear(keys[5], 64, 1)
    return dict(w1=w1, b1=b1, w2=w2, b2=b2,
                wa=wa, ba=ba, wa2=wa2, ba2=ba2,
                wv=wv, bv=bv, wv2=wv2, bv2=bv2)


def reference_forward(x, p, activation="Tanh"):
    """Pure-JAX reference for correctness checking."""
    act = jnp.tanh if activation == "Tanh" else (lambda t: jnp.maximum(t, 0.0))
    h1 = act(x @ p["w1"] + p["b1"])
    h2 = act(h1 @ p["w2"] + p["b2"])
    adv = act(h2 @ p["wa"] + p["ba"]) @ p["wa2"] + p["ba2"]
    val = act(h2 @ p["wv"] + p["bv"]) @ p["wv2"] + p["bv2"]
    return val + adv - jnp.mean(adv)


if __name__ == "__main__":
    n_states = 16
    n_actions = 4

    key = jax.random.PRNGKey(0)
    kx, kp, kx2 = jax.random.split(key, 3)
    params = init_params(kp, n_states, n_actions)

    # Pack once (hoisted out of the per-call forward). f32 = exact semantics.
    W32, B32 = pack_params(params, n_states, n_actions)

    # Case 1: tiny RL-style batch, Tanh, single (partial) tile.
    x = jax.random.normal(kx, (2, n_states), dtype=jnp.float32)
    out = jax.block_until_ready(
        dueling_network_forward(x, W32, B32, n_actions, "Tanh"))
    ref = reference_forward(x, params, "Tanh")
    assert out.shape == (2, n_actions)
    assert jnp.allclose(out, ref, atol=1e-4, rtol=1e-4), (out, ref)

    # Case 2: larger batch with ReLU, multiple grid tiles + partial last block.
    x2 = jax.random.normal(kx2, (300, n_states), dtype=jnp.float32)
    out2 = jax.block_until_ready(
        dueling_network_forward(x2, W32, B32, n_actions, "ReLU", tile_b=128))
    ref2 = reference_forward(x2, params, "ReLU")
    assert out2.shape == (300, n_actions)
    assert jnp.allclose(out2, ref2, atol=1e-4, rtol=1e-4), (out2, ref2)

    # Case 3: bf16 matmul operands (v6e/v7x MXU-native path), relaxed tolerance.
    Wbf, Bbf = pack_params(params, n_states, n_actions,
                           matmul_dtype=jnp.bfloat16)
    out3 = jax.block_until_ready(
        dueling_network_forward(x2, Wbf, Bbf, n_actions, "Tanh"))
    ref3 = reference_forward(x2, params, "Tanh")
    assert out3.shape == (300, n_actions)
    assert jnp.allclose(out3, ref3, atol=5e-2, rtol=5e-2), (out3, ref3)

    print("KERNEL_OK")
</pallas_src>

<mosaic_0001>
module attributes {stable_mosaic.version = 11 : i64} {
  func.func @_dueling_kernel(%arg0: i32, %arg1: memref<8x16xf32, #tpu.memory_space<vmem>>, %arg2: memref<4x128x128xf32, #tpu.memory_space<vmem>>, %arg3: memref<8x128xf32, #tpu.memory_space<vmem>>, %arg4: memref<8x8xf32, #tpu.memory_space<vmem>>) attributes {dimension_semantics = [#tpu.dimension_semantics<parallel>], iteration_bounds = array<i64: 1>, scalar_prefetch = 0 : i64, scratch_operands = 0 : i64, tpu.core_type = #tpu.core_type<tc>, window_params = [{transform_indices = @transform_0, window_bounds = array<i64: 8, 16>}, {pipeline_mode = #tpu.pipeline_mode<synchronous>, transform_indices = @transform_1, window_bounds = array<i64: 4, 128, 128>}, {pipeline_mode = #tpu.pipeline_mode<synchronous>, transform_indices = @transform_2, window_bounds = array<i64: 8, 128>}, {transform_indices = @transform_3, window_bounds = array<i64: 8, 8>}]} {
    %c0 = arith.constant 0 : index
    %c0_0 = arith.constant 0 : index
    %0 = vector.load %arg3[%c0, %c0_0] : memref<8x128xf32, #tpu.memory_space<vmem>>, vector<8x128xf32>
    %c0_1 = arith.constant 0 : index
    %c0_2 = arith.constant 0 : index
    %1 = vector.load %arg1[%c0_1, %c0_2] : memref<8x16xf32, #tpu.memory_space<vmem>>, vector<8x16xf32>
    %c0_3 = arith.constant 0 : index
    %c0_4 = arith.constant 0 : index
    %c0_5 = arith.constant 0 : index
    %2 = vector.load %arg2[%c0_3, %c0_4, %c0_5] : memref<4x128x128xf32, #tpu.memory_space<vmem>>, vector<1x16x128xf32>
    %3 = vector.shape_cast %2 : vector<1x16x128xf32> to vector<16x128xf32>
    %cst = arith.constant dense<0.000000e+00> : vector<8x128xf32>
    %4 = tpu.matmul %1, %3, %cst {dimension_numbers = #tpu.dot_dimension_numbers<[1], [0], [0], [1], [0, 0, 1, 1], [], []>} : vector<8x16xf32>, vector<16x128xf32>, vector<8x128xf32> -> vector<8x128xf32>
    %5 = vector.extract_strided_slice %0 {offsets = [0, 0], sizes = [1, 128], strides = [1, 1]} : vector<8x128xf32> to vector<1x128xf32>
    %6 = vector.broadcast %5 : vector<1x128xf32> to vector<8x128xf32>
    %7 = arith.addf %4, %6 : vector<8x128xf32>
    %8 = math.tanh %7 : vector<8x128xf32>
    %c1 = arith.constant 1 : index
    %c0_6 = arith.constant 0 : index
    %c0_7 = arith.constant 0 : index
    %9 = vector.load %arg2[%c1, %c0_6, %c0_7] : memref<4x128x128xf32, #tpu.memory_space<vmem>>, vector<1x128x128xf32>
    %10 = vector.shape_cast %9 : vector<1x128x128xf32> to vector<128x128xf32>
    %cst_8 = arith.constant dense<0.000000e+00> : vector<8x128xf32>
    %11 = tpu.matmul %8, %10, %cst_8 {dimension_numbers = #tpu.dot_dimension_numbers<[1], [0], [0], [1], [0, 0, 1, 1], [], []>} : vector<8x128xf32>, vector<128x128xf32>, vector<8x128xf32> -> vector<8x128xf32>
    %12 = vector.extract_strided_slice %0 {offsets = [1, 0], sizes = [1, 128], strides = [1, 1]} : vector<8x128xf32> to vector<1x128xf32>
    %13 = vector.broadcast %12 : vector<1x128xf32> to vector<8x128xf32>
    %14 = arith.addf %11, %13 : vector<8x128xf32>
    %15 = math.tanh %14 : vector<8x128xf32>
    %c2 = arith.constant 2 : index
    %c0_9 = arith.constant 0 : index
    %c0_10 = arith.constant 0 : index
    %16 = vector.load %arg2[%c2, %c0_9, %c0_10] : memref<4x128x128xf32, #tpu.memory_space<vmem>>, vector<1x128x128xf32>
    %17 = vector.shape_cast %16 : vector<1x128x128xf32> to vector<128x128xf32>
    %cst_11 = arith.constant dense<0.000000e+00> : vector<8x128xf32>
    %18 = tpu.matmul %15, %17, %cst_11 {dimension_numbers = #tpu.dot_dimension_numbers<[1], [0], [0], [1], [0, 0, 1, 1], [], []>} : vector<8x128xf32>, vector<128x128xf32>, vector<8x128xf32> -> vector<8x128xf32>
    %19 = vector.extract_strided_slice %0 {offsets = [2, 0], sizes = [1, 128], strides = [1, 1]} : vector<8x128xf32> to vector<1x128xf32>
    %20 = vector.broadcast %19 : vector<1x128xf32> to vector<8x128xf32>
    %21 = arith.addf %18, %20 : vector<8x128xf32>
    %22 = math.tanh %21 : vector<8x128xf32>
    %c3 = arith.constant 3 : index
    %c0_12 = arith.constant 0 : index
    %c0_13 = arith.constant 0 : index
    %23 = vector.load %arg2[%c3, %c0_12, %c0_13] : memref<4x128x128xf32, #tpu.memory_space<vmem>>, vector<1x128x128xf32>
    %24 = vector.shape_cast %23 : vector<1x128x128xf32> to vector<128x128xf32>
    %cst_14 = arith.constant dense<0.000000e+00> : vector<8x128xf32>
    %25 = tpu.matmul %22, %24, %cst_14 {dimension_numbers = #tpu.dot_dimension_numbers<[1], [0], [0], [1], [0, 0, 1, 1], [], []>} : vector<8x128xf32>, vector<128x128xf32>, vector<8x128xf32> -> vector<8x128xf32>
    %26 = vector.extract_strided_slice %0 {offsets = [3, 0], sizes = [1, 128], strides = [1, 1]} : vector<8x128xf32> to vector<1x128xf32>
    %27 = vector.broadcast %26 : vector<1x128xf32> to vector<8x128xf32>
    %28 = arith.addf %25, %27 : vector<8x128xf32>
    %29 = vector.extract_strided_slice %28 {offsets = [0, 0], sizes = [8, 8], strides = [1, 1]} : vector<8x128xf32> to vector<8x8xf32>
    %c0_15 = arith.constant 0 : index
    %c0_16 = arith.constant 0 : index
    %30 = vector.load %arg4[%c0_15, %c0_16] : memref<8x8xf32, #tpu.memory_space<vmem>>, vector<8x8xf32>
    tpu.vector_store %arg4[%c0_15, %c0_16], %29 {strides = array<i32>} : memref<8x8xf32, #tpu.memory_space<vmem>>, vector<8x8xf32>,
    return
  }
  func.func @transform_0(%arg0: i32) -> (i32, i32) {
    %c0_i32 = arith.constant 0 : i32
    %c0_i32_0 = arith.constant 0 : i32
    return %arg0, %c0_i32 : i32, i32
  }
  func.func @transform_1(%arg0: i32) -> (i32, i32, i32) {
    %c0_i32 = arith.constant 0 : i32
    %c0_i32_0 = arith.constant 0 : i32
    %c0_i32_1 = arith.constant 0 : i32
    %c0_i32_2 = arith.constant 0 : i32
    return %c0_i32, %c0_i32_0, %c0_i32_1 : i32, i32, i32
  }
  func.func @transform_2(%arg0: i32) -> (i32, i32) {
    %c0_i32 = arith.constant 0 : i32
    %c0_i32_0 = arith.constant 0 : i32
    %c0_i32_1 = arith.constant 0 : i32
    return %c0_i32, %c0_i32_0 : i32, i32
  }
  func.func @transform_3(%arg0: i32) -> (i32, i32) {
    %c0_i32 = arith.constant 0 : i32
    %c0_i32_0 = arith.constant 0 : i32
    return %arg0, %c0_i32 : i32, i32
  }
}

</mosaic_0001>

<bundles_post_ra>
// kernel: tpu_custom_call.1
= control target key start
LH: loop header
LB: loop body
LE: loop exit
PB: predicated region body
PF: predicated region fallthrough
CT: control target
= control target key end

     0   :  { %8 = vsyncpa [#allocation3], 0  ;;  %s915_s0 = inlined_call_operand.hbm [shape: f32[2,16], index: 0, kind: input, shape index: {}]   ;;  %s916_s1 = inlined_call_operand.hbm [shape: f32[4,128,128], index: 1, kind: input, shape index: {}]   ;;  %s917_s2 = inlined_call_operand.hbm [shape: f32[8,128], index: 2, kind: input, shape index: {}]   ;;  %s918_s3 = inlined_call_operand.hbm [shape: f32[2,8], index: 3, kind: output, shape index: {}]  }
   0x1   :  { %9 = vsyncpa [#allocation6], 0 }
   0x2   :  { %10 = vsyncpa [#allocation4], 0 }
   0x3   :  { %15 = vsyncadd [#allocation3], 96  ;;  %s785_s12 = smov [#allocation5]   ;;  %s691_s16 = scalar_lea.hbm %s916_s1, 8192 }
   0x4   :  { %s28_s13 = sshll.u32 %s785_s12, 4  ;;  %p692_p0 = scmp.ne.s32.totalorder %s916_s1, %s691_s16  ;;  %s29_s13 = int_to_ptr.vmem [resolvable:$true] %s28_s13 }
   0x5   :  { %p695_p1 = scmp.lt.u32.totalorder %s691_s16, %s916_s1 }
   0x7   :  { %p697_p2 = pnand %p695_p1, %p692_p0 }
   0x9   :  { %700 = shalt.err (!%p697_p2)
}
   0xa   :  { %s701_s21 = scalar_lea.vmem %s29_s13, 8192  ;;  %p706_p4 = scmp.lt.s32.totalorder %s29_s13, %s29_s13 }
   0xb   :  { %p702_p3 = scmp.ne.s32.totalorder %s29_s13, %s701_s21  ;;  %p707_p5 = scmp.lt.s32.totalorder %s701_s21, %s701_s21 }
   0xd   :  { %p708_p6 = por %p707_p5, %p706_p4 }
   0xf   :  { %p709_p7 = pnand %p708_p6, %p702_p3 }
  0x11   :  { %712 = shalt.err (!%p709_p7)
}
  0x12   :  { %s786_s22 = smov 128   ;;  %s787_s23 = smov 8  }
  0x13   :  { %34 = dma.hbm_to_vmem [thread:$0]  %s916_s1, 8192, %s29_s13, [#allocation6], %s786_s22, %s786_s22, %s787_s23  }
  0x14   :  { %s788_s26 = smov [#allocation2]   ;;  %s713_s30 = scalar_lea.hbm %s915_s0, 32 }
  0x15   :  { %s16_s27 = sshll.u32 %s788_s26, 4  ;;  %p714_p8 = scmp.ne.s32.totalorder %s915_s0, %s713_s30  ;;  %s17_s27 = int_to_ptr.vmem [resolvable:$true] %s16_s27 }
  0x16   :  { %p717_p9 = scmp.lt.u32.totalorder %s713_s30, %s915_s0 }
  0x18   :  { %p719_p10 = pnand %p717_p9, %p714_p8 }
  0x1a   :  { %722 = shalt.err (!%p719_p10)
}
  0x1b   :  { %s723_s8 = scalar_lea.vmem %s17_s27, 32  ;;  %s727_s1 = scalar_lea.vmem %s17_s27, 128 }
  0x1c   :  { %p724_p11 = scmp.ne.s32.totalorder %s17_s27, %s723_s8  ;;  %p728_p12 = scmp.lt.s32.totalorder %s17_s27, %s17_s27 }
  0x1d   :  { %p729_p13 = scmp.lt.s32.totalorder %s727_s1, %s723_s8 }
  0x1f   :  { %p730_p0 = por %p729_p13, %p728_p12 }
  0x21   :  { %p731_p1 = pnand %p730_p0, %p724_p11 }
  0x23   :  { %734 = shalt.err (!%p731_p1)
}
  0x24   :  { %s789_s9 = smov 32   ;;  %s790_s10 = smov 2  }
  0x25   :  { %22 = dma.hbm_to_vmem [thread:$0]  %s915_s0, 32, %s17_s27, [#allocation3], %s789_s9, %s789_s9, %s790_s10  }
  0x26   :  { %s791_s13 = smov [#allocation7]   ;;  %s735_s17 = scalar_lea.hbm %s917_s2, 128 }
  0x27   :  { %s41_s14 = sshll.u32 %s791_s13, 4  ;;  %p736_p2 = scmp.ne.s32.totalorder %s917_s2, %s735_s17  ;;  %s42_s14 = int_to_ptr.vmem [resolvable:$true] %s41_s14 }
  0x28   :  { %p739_p3 = scmp.lt.u32.totalorder %s735_s17, %s917_s2 }
  0x2a   :  { %p741_p4 = pnand %p739_p3, %p736_p2 }
  0x2c   :  { %744 = shalt.err (!%p741_p4)
}
  0x2d   :  { %s745_s22 = scalar_lea.vmem %s42_s14, 128  ;;  %p750_p6 = scmp.lt.s32.totalorder %s42_s14, %s42_s14 }
  0x2e   :  { %p746_p5 = scmp.ne.s32.totalorder %s42_s14, %s745_s22  ;;  %p751_p7 = scmp.lt.s32.totalorder %s745_s22, %s745_s22 }
  0x30   :  { %p752_p8 = por %p751_p7, %p750_p6 }
  0x32   :  { %p753_p9 = pnand %p752_p8, %p746_p5 }
  0x34   :  { %756 = shalt.err (!%p753_p9)
}
  0x35   :  { %44 = dma.hbm_to_vmem [thread:$0]  %s917_s2, 128, %s42_s14, [#allocation6]  }
  0x36   :  { %779 = dma.done.wait [#allocation3], 128  }
  0x37   :  { %780 = vsyncadd [#allocation3], 4294967168 }
  0x38   :  { %781 = dma.done.wait [#allocation6], 8320  }
  0x39   :  { %782 = vsyncadd [#allocation6], 4294958976  ;;  %v792_v0 = vmov 0.0|0.0   ;;  %vm793_vm0 = vmmov 0   ;;  %v794_v1 = vmov 0.0   ;;  %v56_v2 = vld [vmem:[#allocation5] sm:$0xff]  ;;  %v58_v45 = vlaneseq }
  0x3a   :  { %599 = vmatprep.subr.bf16.mxu0 %v792_v0  ;;  %491 = vmatprep.mubr.msk.f32.mxu0 %vm793_vm0, %v794_v1  ;;  %v57_v3 = vld [vmem:[#allocation5 + $0x8] sm:$0xff]  ;;  %v138_v5 = vld [vmem:[#allocation5 + $0x80] sm:$0xff]  ;;  %v140_v7 = vld [vmem:[#allocation5 + $0x90] sm:$0xff]  ;;  %vm62_vm1 = vcmask 130048   ;;  %vm412_vm2 = vcmask 64512  }
  0x3b   :  { %602 = vmatprep.subr.bf16.mxu1 %v792_v0  ;;  %526 = vmatprep.mubr.msk.f32.mxu1 %vm793_vm0, %v794_v1  ;;  %v600_v4 = vpack.c.bf16 %v57_v3, %v56_v2  ;;  %v139_v6 = vld [vmem:[#allocation5 + $0x88] sm:$0xff]  ;;  %v141_v9 = vld [vmem:[#allocation5 + $0x98] sm:$0xff]  ;;  %v142_v12 = vld [vmem:[#allocation5 + $0xa0] sm:$0xff]  ;;  %v877_v46 = vshrl.u32 %v58_v45, 7 }
  0x3c   :  { %v603_v8 = vpack.c.bf16 %v139_v6, %v138_v5  ;;  %v55_v10 = vld [vmem:[#allocation2] sm:$0xff]  ;;  %v606_v11 = vpack.c.bf16 %v141_v9, %v140_v7  ;;  %v143_v13 = vld [vmem:[#allocation5 + $0xa8] sm:$0xff]  ;;  %v144_v15 = vld [vmem:[#allocation5 + $0xb0] sm:$0xff] }
  0x3d   :  { %601 = vmatpush3.bf16.msra.mxu0 %v600_v4  ;;  %v609_v14 = vpack.c.bf16 %v143_v13, %v142_v12  ;;  %v145_v16 = vld [vmem:[#allocation5 + $0xb8] sm:$0xff]  ;;  %v146_v18 = vld [vmem:[#allocation5 + $0xc0] sm:$0xff]  ;;  %v147_v19 = vld [vmem:[#allocation5 + $0xc8] sm:$0xff]  ;;  %v60_v47 = vsub.s32 0, %v877_v46 }
  0x3e   :  { %604 = vmatpush3.bf16.msra.mxu1 %v603_v8  ;;  %626 = vmatprep.subr.bf16.mxu0 %v792_v0  ;;  %v612_v17 = vpack.c.bf16 %v145_v16, %v144_v15  ;;  %v615_v20 = vpack.c.bf16 %v147_v19, %v146_v18  ;;  %v148_v21 = vld [vmem:[#allocation5 + $0xd0] sm:$0xff]  ;;  %v149_v22 = vld [vmem:[#allocation5 + $0xd8] sm:$0xff]  ;;  %v150_v24 = vld [vmem:[#allocation5 + $0xe0] sm:$0xff]  ;;  %v156_v15 = vsub.s32 1, %v877_v46 }
  0x3f   :  { %605 = vmatprep.subr.bf16.mxu1 %v792_v0  ;;  %v618_v23 = vpack.c.bf16 %v149_v22, %v148_v21  ;;  %v151_v25 = vld [vmem:[#allocation5 + $0xe8] sm:$0xff]  ;;  %v152_v27 = vld [vmem:[#allocation5 + $0xf0] sm:$0xff]  ;;  %v153_v28 = vld [vmem:[#allocation5 + $0xf8] sm:$0xff] }
  0x40   :  { %492 = vmatmul.mubr.msk.f32.vlgmr.msra.gmra.mrb[0].mxu0 %vm62_vm1, %v55_v10  ;;  %v621_v26 = vpack.c.bf16 %v151_v25, %v150_v24  ;;  %v624_v29 = vpack.c.bf16 %v153_v28, %v152_v27  ;;  %v230_v30 = vld [vmem:[#allocation5 + $0x100] sm:$0xff]  ;;  %v231_v31 = vld [vmem:[#allocation5 + $0x108] sm:$0xff]  ;;  %v232_v32 = vld [vmem:[#allocation5 + $0x110] sm:$0xff] }
  0x41   :  { %561 = vmatprep.mubr.msk.f32.mxu0 %vm793_vm0, %v794_v1  ;;  %v627_v33 = vpack.c.bf16 %v231_v31, %v230_v30  ;;  %v233_v34 = vld [vmem:[#allocation5 + $0x118] sm:$0xff]  ;;  %v234_v36 = vld [vmem:[#allocation5 + $0x120] sm:$0xff]  ;;  %v235_v37 = vld [vmem:[#allocation5 + $0x128] sm:$0xff]  ;;  %v248_v30 = vsub.s32 2, %v877_v46 }
  0x42   :  { %607 = vmatpush3.bf16.msra.mxu1 %v606_v11  ;;  %v630_v35 = vpack.c.bf16 %v233_v34, %v232_v32  ;;  %v633_v38 = vpack.c.bf16 %v235_v37, %v234_v36  ;;  %v236_v39 = vld [vmem:[#allocation5 + $0x130] sm:$0xff]  ;;  %v237_v40 = vld [vmem:[#allocation5 + $0x138] sm:$0xff]  ;;  %v238_v42 = vld [vmem:[#allocation5 + $0x140] sm:$0xff]  ;;  %v340_v36 = vsub.s32 3, %v877_v46 }
  0x43   :  { %608 = vmatprep.subr.bf16.mxu1 %v792_v0  ;;  %628 = vmatpush3.bf16.msra.mxu0 %v627_v33  ;;  %v636_v41 = vpack.c.bf16 %v237_v40, %v236_v39  ;;  %v239_v43 = vld [vmem:[#allocation5 + $0x148] sm:$0xff]  ;;  %v880_v48 = vld [vmem:[#allocation7] sm:$0xff]  ;;  %v240_v54 = vld [vmem:[#allocation5 + $0x150] sm:$0xff] }
  0x44   :  { %629 = vmatprep.subr.bf16.mxu0 %v792_v0  ;;  %v639_v44 = vpack.c.bf16 %v239_v43, %v238_v42  ;;  %v61_v49 = vrot.slane %v880_v48, %v60_v47  ;;  %v241_v55 = vld [vmem:[#allocation5 + $0x158] sm:$0xff]  ;;  %v242_v57 = vld [vmem:[#allocation5 + $0x160] sm:$0xff]  ;;  %v243_v58 = vld [vmem:[#allocation5 + $0x168] sm:$0xff]  ;;  %v157_v16 = vrot.slane %v880_v48, %v156_v15  ;;  %v249_v31 = vrot.slane %v880_v48, %v248_v30 }
  0x45   :  { %v642_v56 = vpack.c.bf16 %v241_v55, %v240_v54  ;;  %v645_v59 = vpack.c.bf16 %v243_v58, %v242_v57  ;;  %v244_v60 = vld [vmem:[#allocation5 + $0x170] sm:$0xff]  ;;  %v245_v61 = vld [vmem:[#allocation5 + $0x178] sm:$0xff]  ;;  %v322_v63 = vld [vmem:[#allocation5 + $0x180] sm:$0xff]  ;;  %v341_v37 = vrot.slane %v880_v48, %v340_v36 }
  0x46   :  { %610 = vmatpush3.bf16.msra.mxu1 %v609_v14  ;;  %v648_v62 = vpack.c.bf16 %v245_v61, %v244_v60  ;;  %v323_v2 = vld [vmem:[#allocation5 + $0x188] sm:$0xff]  ;;  %v324_v3 = vld [vmem:[#allocation5 + $0x190] sm:$0xff]  ;;  %v325_v4 = vld [vmem:[#allocation5 + $0x198] sm:$0xff] }
  0x47   :  { %611 = vmatprep.subr.bf16.mxu1 %v792_v0  ;;  %631 = vmatpush3.bf16.msra.mxu0 %v630_v35  ;;  %v654_v5 = vpack.c.bf16 %v325_v4, %v324_v3  ;;  %v326_v6 = vld [vmem:[#allocation5 + $0x1a0] sm:$0xff]  ;;  %v327_v7 = vld [vmem:[#allocation5 + $0x1a8] sm:$0xff]  ;;  %v328_v9 = vld [vmem:[#allocation5 + $0x1b0] sm:$0xff] }
  0x48   :  { %632 = vmatprep.subr.bf16.mxu0 %v792_v0  ;;  %v657_v8 = vpack.c.bf16 %v327_v7, %v326_v6  ;;  %v329_v10 = vld [vmem:[#allocation5 + $0x1b8] sm:$0xff]  ;;  %v330_v12 = vld [vmem:[#allocation5 + $0x1c0] sm:$0xff]  ;;  %v331_v13 = vld [vmem:[#allocation5 + $0x1c8] sm:$0xff] }
  0x49   :  { %v660_v11 = vpack.c.bf16 %v329_v10, %v328_v9  ;;  %v663_v14 = vpack.c.bf16 %v331_v13, %v330_v12  ;;  %v332_v21 = vld [vmem:[#allocation5 + $0x1d0] sm:$0xff]  ;;  %v333_v22 = vld [vmem:[#allocation5 + $0x1d8] sm:$0xff]  ;;  %v334_v24 = vld [vmem:[#allocation5 + $0x1e0] sm:$0xff] }
  0x4a   :  { %613 = vmatpush3.bf16.msra.mxu1 %v612_v17  ;;  %v335_v25 = vld [vmem:[#allocation5 + $0x1e8] sm:$0xff]  ;;  %v336_v27 = vld [vmem:[#allocation5 + $0x1f0] sm:$0xff]  ;;  %v337_v28 = vld [vmem:[#allocation5 + $0x1f8] sm:$0xff] }
  0x4b   :  { %614 = vmatprep.subr.bf16.mxu1 %v792_v0  ;;  %634 = vmatpush3.bf16.msra.mxu0 %v633_v38 }
  0x4c   :  { %635 = vmatprep.subr.bf16.mxu0 %v792_v0 }
  0x4e   :  { %616 = vmatpush3.bf16.msra.mxu1 %v615_v20 }
  0x4f   :  { %617 = vmatprep.subr.bf16.mxu1 %v792_v0  ;;  %637 = vmatpush3.bf16.msra.mxu0 %v636_v41 }
  0x50   :  { %638 = vmatprep.subr.bf16.mxu0 %v792_v0 }
  0x52   :  { %619 = vmatpush3.bf16.msra.mxu1 %v618_v23  ;;  %v666_v23 = vpack.c.bf16 %v333_v22, %v332_v21 }
  0x53   :  { %620 = vmatprep.subr.bf16.mxu1 %v792_v0  ;;  %640 = vmatpush3.bf16.msra.mxu0 %v639_v44 }
  0x54   :  { %641 = vmatprep.subr.bf16.mxu0 %v792_v0 }
  0x56   :  { %622 = vmatpush3.bf16.msra.mxu1 %v621_v26  ;;  %v669_v26 = vpack.c.bf16 %v335_v25, %v334_v24 }
  0x57   :  { %623 = vmatprep.subr.bf16.mxu1 %v792_v0  ;;  %643 = vmatpush3.bf16.msra.mxu0 %v642_v56 }
  0x58   :  { %644 = vmatprep.subr.bf16.mxu0 %v792_v0 }
  0x5a   :  { %625 = vmatpush3.bf16.msra.mxu1 %v624_v29  ;;  %v672_v29 = vpack.c.bf16 %v337_v28, %v336_v27 }
  0x5b   :  { %650 = vmatprep.subr.bf16.mxu1 %v792_v0  ;;  %646 = vmatpush3.bf16.msra.mxu0 %v645_v59 }
  0x5c   :  { %647 = vmatprep.subr.bf16.mxu0 %v792_v0 }
  0x5f   :  { %649 = vmatpush3.bf16.msra.mxu0 %v648_v62 }
 0x113   :  { %v132_v50 = vpop.f32.mrb[0].mxu0 }
 0x114   :  { %v133_v51 = vadd.f32 %v132_v50, %v61_v49  ;;  %v493_v52 = vpop.f32.mrb[1].mxu0 }
 0x116   :  { %685 = vtanh.f32 %v133_v51 }
 0x120   :  { %v686_v53 = vpop.eup %685 }
 0x121   :  { %527 = vmatmul.mubr.f32.vlgmr.msra.gmra.mrb[0].mxu1 %v686_v53 }
 0x122   :  { %596 = vmatprep.mubr.msk.f32.mxu1 %vm793_vm0, %v794_v1  ;;  %v651_v1 = vpack.c.bf16 %v323_v2, %v322_v63 }
 0x124   :  { %652 = vmatpush3.bf16.msra.mxu1 %v651_v1 }
 0x125   :  { %653 = vmatprep.subr.bf16.mxu1 %v792_v0 }
 0x128   :  { %655 = vmatpush3.bf16.msra.mxu1 %v654_v5 }
 0x129   :  { %656 = vmatprep.subr.bf16.mxu1 %v792_v0 }
 0x12c   :  { %658 = vmatpush3.bf16.msra.mxu1 %v657_v8 }
 0x12d   :  { %659 = vmatprep.subr.bf16.mxu1 %v792_v0 }
 0x130   :  { %661 = vmatpush3.bf16.msra.mxu1 %v660_v11 }
 0x131   :  { %662 = vmatprep.subr.bf16.mxu1 %v792_v0 }
 0x134   :  { %664 = vmatpush3.bf16.msra.mxu1 %v663_v14 }
 0x135   :  { %665 = vmatprep.subr.bf16.mxu1 %v792_v0 }
 0x138   :  { %667 = vmatpush3.bf16.msra.mxu1 %v666_v23 }
 0x139   :  { %668 = vmatprep.subr.bf16.mxu1 %v792_v0 }
 0x13c   :  { %670 = vmatpush3.bf16.msra.mxu1 %v669_v26 }
 0x13d   :  { %671 = vmatprep.subr.bf16.mxu1 %v792_v0 }
 0x140   :  { %673 = vmatpush3.bf16.msra.mxu1 %v672_v29 }
 0x1f4   :  { %v224_v17 = vpop.f32.mrb[0].mxu1 }
 0x1f5   :  { %v225_v18 = vadd.f32 %v224_v17, %v157_v16  ;;  %v528_v19 = vpop.f32.mrb[1].mxu1 }
 0x1f7   :  { %687 = vtanh.f32 %v225_v18 }
 0x201   :  { %v688_v20 = vpop.eup %687 }
 0x202   :  { %562 = vmatmul.mubr.f32.vlgmr.msra.gmra.mrb[2].mxu0 %v688_v20 }
 0x2d5   :  { %v316_v32 = vpop.f32.mrb[2].mxu0 }
 0x2d6   :  { %v317_v33 = vadd.f32 %v316_v32, %v249_v31  ;;  %v563_v34 = vpop.f32.mrb[3].mxu0 }
 0x2d8   :  { %689 = vtanh.f32 %v317_v33 }
 0x2e2   :  { %v690_v35 = vpop.eup %689 }
 0x2e3   :  { %597 = vmatmul.mubr.f32.vlgmr.msra.gmra.mrb[2].mxu1 %v690_v35 }
 0x3b6   :  { %v408_v38 = vpop.f32.mrb[2].mxu1 }
 0x3b7   :  { %v409_v39 = vadd.f32 %v408_v38, %v341_v37  ;;  %v598_v40 = vpop.f32.mrb[3].mxu1 }
 0x3b9   :  { %413 = vst.msk [vmem:[#allocation8] sm:$0xff] %vm412_vm2, %v409_v39 }
 0x3ba   :  { %418 = vsyncadd [#allocation4], 96  ;;  %s795_s2 = smov [#allocation8]  }
 0x3bb   :  { %s419_s24 = sshll.u32 %s795_s2, 4  ;;  %s420_s24 = int_to_ptr.vmem [resolvable:$true] %s419_s24 }
 0x3bc   :  { %s757_s25 = scalar_lea.vmem %s420_s24, 32  ;;  %s761_s26 = scalar_lea.vmem %s420_s24, 128 }
 0x3bd   :  { %p758_p10 = scmp.ne.s32.totalorder %s420_s24, %s757_s25  ;;  %p762_p11 = scmp.lt.s32.totalorder %s420_s24, %s420_s24 }
 0x3be   :  { %p763_p12 = scmp.lt.s32.totalorder %s761_s26, %s757_s25 }
 0x3c0   :  { %p764_p13 = por %p763_p12, %p762_p11 }
 0x3c2   :  { %p765_p0 = pnand %p764_p13, %p758_p10 }
 0x3c4   :  { %768 = shalt.err (!%p765_p0)
}
 0x3c5   :  { %s769_s29 = scalar_lea.hbm %s918_s3, 32 }
 0x3c6   :  { %p770_p1 = scmp.ne.s32.totalorder %s918_s3, %s769_s29  ;;  %p773_p2 = scmp.lt.u32.totalorder %s769_s29, %s918_s3 }
 0x3c8   :  { %p775_p3 = pnand %p773_p2, %p770_p1 }
 0x3ca   :  { %778 = shalt.err (!%p775_p3)
}
 0x3cb   :  { %425 = dma.vmem_to_hbm [thread:$0]  %s420_s24, 32, %s918_s3, [#allocation4], %s789_s9, %s789_s9, %s790_s10  }
 0x3cc   :  { %783 = dma.done.wait [#allocation4], 128  }
 0x3cd   :  { %784 = vsyncadd [#allocation4], 4294967168 }
 0x3ce   :  { %429 = vsyncpa [#allocation3], 1 }
 0x3cf   :  { %430 = vsyncpa [#allocation6], 1 }
 0x3d0   :  { %431 = vsyncpa [#allocation4], 1 }

</bundles_post_ra>
